<compile_context>
chip_gen: v5e
topology: v5e:2x2
jax: 0.10.0
libtpu: 0.0.40
codegen_flags: <defaults>
</compile_context>

<pallas_src>
import functools
import math

import jax
import jax.numpy as jnp
from jax import lax
from jax.experimental import pallas as pl
from jax.experimental.pallas import tpu as pltpu


def _make_ca_kernel(H, W, row_chunk, n_chunks):
    """Kernel for one batch tile.

    Ref shapes (rows = Bt*C, HWp = lane-padded H*W, mp = padded mip):
      x_ref   : (rows, HWp)        io_dtype
      w1_ref  : (Bt*mp, rows)      io_dtype   (BN folded, block-diag over the batch tile)
      b1_ref  : (Bt*mp, 1)         f32
      wh_ref  : (rows, Bt*mp)      io_dtype
      ww_ref  : (rows, Bt*mp)      io_dtype
      phw_ref : (HWp, H+W)         io_dtype   (fused mean-over-W | mean-over-H pooling)
      eh_ref  : (H, HWp)           io_dtype   (gate broadcast over W)
      ew_ref  : (W, HWp)           io_dtype   (gate broadcast over H)
      out_ref : (rows, HWp)        io_dtype
      sh_ref  : (rows, H)          f32 scratch
      sw_ref  : (rows, W)          f32 scratch
    """

    def kernel(x_ref, w1_ref, b1_ref, wh_ref, ww_ref, phw_ref, eh_ref, ew_ref,
               out_ref, sh_ref, sw_ref):
        wdt = w1_ref.dtype

        # Fused coordinate pooling on the MXU (x load is not held live past this dot).
        xp = jnp.dot(x_ref[...], phw_ref[...],
                     preferred_element_type=jnp.float32)                # (rows, H+W) f32

        # Fused 1x1 conv C -> mip (BN pre-folded) over both halves, then SiLU.
        y = jnp.dot(w1_ref[...], xp.astype(wdt),
                    preferred_element_type=jnp.float32) + b1_ref[...]   # (Bt*mp, H+W)
        y = y * jax.nn.sigmoid(y)                                       # SiLU (EUP sigmoid)

        # F_h / F_w 1x1 convs mip -> C, sigmoid gates stashed in small VMEM scratch.
        y_h = y[:, :H].astype(wdt)
        y_w = y[:, H:].astype(wdt)
        sh_ref[...] = jax.nn.sigmoid(
            jnp.dot(wh_ref[...], y_h, preferred_element_type=jnp.float32))  # (rows, H)
        sw_ref[...] = jax.nn.sigmoid(
            jnp.dot(ww_ref[...], y_w, preferred_element_type=jnp.float32))  # (rows, W)

        # Gate tail in row chunks: gate[r, h*W + w] = s_h[r, h] * s_w[r, w]; out = x * gate.
        def tail(start):
            sh = sh_ref[pl.ds(start, row_chunk), :].astype(eh_ref.dtype)
            sw = sw_ref[pl.ds(start, row_chunk), :].astype(ew_ref.dtype)
            gate = (jnp.dot(sh, eh_ref[...], preferred_element_type=jnp.float32) *
                    jnp.dot(sw, ew_ref[...], preferred_element_type=jnp.float32))
            xr = x_ref[pl.ds(start, row_chunk), :].astype(jnp.float32)
            out_ref[pl.ds(start, row_chunk), :] = (xr * gate).astype(out_ref.dtype)

        if n_chunks == 1:
            tail(0)
        else:
            def body(c, carry):
                start = c * row_chunk
                if row_chunk % 8 == 0:
                    start = pl.multiple_of(start, 8)
                tail(start)
                return carry
            lax.fori_loop(0, n_chunks, body, 0, unroll=n_chunks <= 4)

    return kernel


@functools.lru_cache(maxsize=None)
def _spatial_constants(H, W, HWp, dtype_name):
    """Cached pooling / gate-broadcast matrices (zeroed in the lane-padding region)."""
    dt = jnp.dtype(dtype_name)
    pos = jnp.arange(HWp, dtype=jnp.int32)
    valid = pos < H * W
    row_h = jnp.where(valid, pos // W, -1)
    row_w = jnp.where(valid, pos % W, -1)
    pool_h = (row_h[:, None] == jnp.arange(H)[None, :]).astype(jnp.float32) / W
    pool_w = (row_w[:, None] == jnp.arange(W)[None, :]).astype(jnp.float32) / H
    pool_hw = jnp.concatenate([pool_h, pool_w], axis=1).astype(dt)    # (HWp, H+W)
    expand_h = (jnp.arange(H)[:, None] == row_h[None, :]).astype(dt)  # (H, HWp)
    expand_w = (jnp.arange(W)[:, None] == row_w[None, :]).astype(dt)  # (W, HWp)
    return pool_hw, expand_h, expand_w


def _choose_batch_tile(B, C, mip_p, HWp, itemsize):
    # x/out block <= ~4 MiB: keeps double-buffered blocks comfortably inside v7x's 64 MiB
    # physical VMEM and within a raised scoped limit on v5e (16 MiB default).
    bt = max(1, (4 << 20) // max(1, C * HWp * itemsize))
    # Block-diagonal weights grow as bt^2: cap them at ~2 MiB.
    while bt > 1 and bt * bt * C * mip_p * itemsize > (2 << 20):
        bt //= 2
    bt = min(bt, B, 16)
    # Ensure >= 2 grid tiles when B allows it so the "parallel" axis feeds both v7x TCs.
    if bt >= B and B > 1:
        bt = max(1, B // 2)
    while B % bt != 0:
        bt -= 1
    # Keep the x/out block sublane dim a multiple of 8 (else fall back to one full block).
    if (bt * C) % 8 != 0 and bt != B:
        bt = B
    return max(bt, 1)


def _row_chunking(rows, HWp):
    # Keep each gate/x chunk at <= ~512 KiB of f32 live data.
    target = max(8, (512 << 10) // (HWp * 4))
    row_chunk = rows
    if rows > target:
        for cand in range(target, 0, -1):
            if rows % cand == 0:
                row_chunk = cand
                break
    return row_chunk, rows // row_chunk


def ca_block(x, w1, wh, ww, gamma, beta, running_mean, running_var, *,
             eps=1e-5, batch_tile=None, io_dtype=jnp.bfloat16, alias_input=False):
    """
    x: (B, C, H, W); w1: (mip, C); wh/ww: (C, mip);
    gamma/beta/running_mean/running_var: (mip,)  (eval-mode BatchNorm2d parameters).
    Returns (B, C, H, W) in io_dtype (bf16 by default to halve HBM traffic).
    """
    B, C, H, W = x.shape
    mip = w1.shape[0]
    HW = H * W
    HWp = ((HW + 127) // 128) * 128                  # lane-dense guard
    mip_p = ((mip + 7) // 8) * 8                     # keep MXU dims >= 8
    io_dtype = jnp.dtype(io_dtype)
    itemsize = io_dtype.itemsize

    if batch_tile is None:
        batch_tile = _choose_batch_tile(B, C, mip_p, HWp, itemsize)
    if B % batch_tile != 0:
        raise ValueError("batch_tile must divide B")
    Bt = batch_tile
    n_tiles = B // Bt
    rows = Bt * C

    # ---- fold eval-mode BN into conv_1x1 (wrapper-side, zero kernel cost) ----
    scale = gamma * lax.rsqrt(running_var + eps)                         # (mip,)
    w1f = jnp.zeros((mip_p, C), jnp.float32).at[:mip].set(w1 * scale[:, None])
    b1f = jnp.zeros((mip_p,), jnp.float32).at[:mip].set(beta - running_mean * scale)
    whp = jnp.zeros((C, mip_p), jnp.float32).at[:, :mip].set(wh.astype(jnp.float32))
    wwp = jnp.zeros((C, mip_p), jnp.float32).at[:, :mip].set(ww.astype(jnp.float32))

    # ---- block-diagonal (per-batch-tile) weights: kernel only ever does 2D matmuls ----
    # (Bt is capped so these stay small; for much larger tiles restructure to shared
    #  weights + an in-kernel loop instead of kron.)
    eye_b = jnp.eye(Bt, dtype=jnp.float32)
    w1_blk = jnp.kron(eye_b, w1f).astype(io_dtype)                      # (Bt*mp, Bt*C)
    wh_blk = jnp.kron(eye_b, whp).astype(io_dtype)                      # (Bt*C, Bt*mp)
    ww_blk = jnp.kron(eye_b, wwp).astype(io_dtype)                      # (Bt*C, Bt*mp)
    b1_blk = jnp.tile(b1f, Bt)[:, None]                                  # (Bt*mp, 1) f32

    # ---- cached pooling / gate-broadcast constants ----
    pool_hw, expand_h, expand_w = _spatial_constants(H, W, HWp, io_dtype.name)

    # Lane-dense view of x (free reshape), padded to HWp lanes if needed.
    x2d = x.astype(io_dtype).reshape(B * C, HW)
    if HWp != HW:
        x2d = jnp.pad(x2d, ((0, 0), (0, HWp - HW)))

    # ---- VMEM budget: double-buffered x/out + (single-buffered) constants + scratch ----
    x_block_bytes = rows * HWp * itemsize
    const_bytes = ((w1_blk.size + wh_blk.size + ww_blk.size
                    + pool_hw.size + expand_h.size + expand_w.size) * itemsize
                   + b1_blk.size * 4)
    scratch_bytes = rows * 4 * (max(H, 128) + max(W, 128))
    vmem_est = 4 * x_block_bytes + 2 * const_bytes + scratch_bytes + (2 << 20)
    vmem_limit = int(min(max(vmem_est, 32 << 20), 56 << 20))            # < v7x 64 MiB phys

    row_chunk, n_chunks = _row_chunking(rows, HWp)
    kernel = _make_ca_kernel(H, W, row_chunk, n_chunks)

    def const_spec(arr):
        # Grid-invariant input: constant index_map + single pipeline buffer.
        return pl.BlockSpec(arr.shape, lambda i: (0, 0), pipeline_mode=pl.Buffered(1))

    in_specs = [
        pl.BlockSpec((rows, HWp), lambda i: (i, 0)),    # x tile (double-buffered)
        const_spec(w1_blk),
        const_spec(b1_blk),
        const_spec(wh_blk),
        const_spec(ww_blk),
        const_spec(pool_hw),
        const_spec(expand_h),
        const_spec(expand_w),
    ]

    out2d = pl.pallas_call(
        kernel,
        out_shape=jax.ShapeDtypeStruct((B * C, HWp), io_dtype),
        grid_spec=pltpu.PrefetchScalarGridSpec(
            num_scalar_prefetch=0,
            grid=(n_tiles,),
            in_specs=in_specs,
            out_specs=pl.BlockSpec((rows, HWp), lambda i: (i, 0)),
            scratch_shapes=[pltpu.VMEM((rows, H), jnp.float32),
                            pltpu.VMEM((rows, W), jnp.float32)],
        ),
        compiler_params=pltpu.CompilerParams(
            dimension_semantics=("parallel",),
            vmem_limit_bytes=vmem_limit),
        input_output_aliases=({0: 0} if alias_input else {}),
    )(x2d, w1_blk, b1_blk, wh_blk, ww_blk, pool_hw, expand_h, expand_w)

    if HWp != HW:
        out2d = out2d[:, :HW]
    return out2d.reshape(B, C, H, W)


def ca_block_ref(x, w1, wh, ww, gamma, beta, running_mean, running_var, eps=1e-5):
    """Pure-JAX f32 reference of the same forward pass (for correctness check)."""
    B, C, H, W = x.shape
    x_h = x.mean(axis=3)                                             # (B,C,H)
    x_w = x.mean(axis=2)                                             # (B,C,W)
    cat = jnp.concatenate([x_h, x_w], axis=2)                        # (B,C,H+W)
    y = jnp.einsum('mc,bcl->bml', w1, cat)
    y = ((y - running_mean[None, :, None])
         * lax.rsqrt(running_var + eps)[None, :, None]
         * gamma[None, :, None] + beta[None, :, None])
    y = y * jax.nn.sigmoid(y)                                        # SiLU
    s_h = jax.nn.sigmoid(jnp.einsum('cm,bmh->bch', wh, y[:, :, :H]))
    s_w = jax.nn.sigmoid(jnp.einsum('cm,bmw->bcw', ww, y[:, :, H:]))
    return x * s_h[:, :, :, None] * s_w[:, :, None, :]


if __name__ == "__main__":
    # Shapes consistent with the module: channel=32, reduction=8 -> mip=4.
    B, C, H, W = 2, 32, 16, 16
    reduction = 8
    mip = C // reduction

    key = jax.random.PRNGKey(0)
    kx, k1, kh, kw, km, kv = jax.random.split(key, 6)

    x = jax.random.normal(kx, (B, C, H, W), dtype=jnp.float32)

    # Kaiming-style init matching the module's __init__ (n = out_channels for 1x1 convs).
    w1 = jax.random.normal(k1, (mip, C), dtype=jnp.float32) * math.sqrt(2.0 / mip)
    wh = jax.random.normal(kh, (C, mip), dtype=jnp.float32) * math.sqrt(2.0 / C)
    ww = jax.random.normal(kw, (C, mip), dtype=jnp.float32) * math.sqrt(2.0 / C)

    # Eval-mode BN parameters (gamma=1, beta=0 per module init; non-trivial running stats
    # to exercise the BN-folding path).
    gamma = jnp.ones((mip,), jnp.float32)
    beta = jnp.zeros((mip,), jnp.float32)
    running_mean = 0.1 * jax.random.normal(km, (mip,), jnp.float32)
    running_var = 1.0 + 0.1 * jax.random.uniform(kv, (mip,), jnp.float32)

    ref = jax.block_until_ready(
        ca_block_ref(x, w1, wh, ww, gamma, beta, running_mean, running_var))

    # f32 I/O path: tight check against the f32 reference.
    out_f32 = jax.block_until_ready(
        ca_block(x, w1, wh, ww, gamma, beta, running_mean, running_var,
                 io_dtype=jnp.float32))
    assert out_f32.shape == (B, C, H, W)
    assert jnp.allclose(out_f32, ref, atol=1e-4, rtol=1e-4), "f32 mismatch vs reference"

    # bf16 I/O path (default): halves HBM bytes; loose tolerance vs the f32 reference.
    out_bf16 = jax.block_until_ready(
        ca_block(x, w1, wh, ww, gamma, beta, running_mean, running_var))
    assert out_bf16.shape == (B, C, H, W)
    assert out_bf16.dtype == jnp.bfloat16
    assert jnp.allclose(out_bf16.astype(jnp.float32), ref, atol=1e-1, rtol=1e-1), \
        "bf16 mismatch vs reference"

    print("KERNEL_OK")
</pallas_src>

<mosaic_0001>
module attributes {stable_mosaic.version = 11 : i64} {
  func.func @kernel(%arg0: i32, %arg1: memref<32x256xf32, #tpu.memory_space<vmem>>, %arg2: memref<8x32xf32, #tpu.memory_space<vmem>>, %arg3: memref<8x1xf32, #tpu.memory_space<vmem>>, %arg4: memref<32x8xf32, #tpu.memory_space<vmem>>, %arg5: memref<32x8xf32, #tpu.memory_space<vmem>>, %arg6: memref<256x32xf32, #tpu.memory_space<vmem>>, %arg7: memref<16x256xf32, #tpu.memory_space<vmem>>, %arg8: memref<16x256xf32, #tpu.memory_space<vmem>>, %arg9: memref<32x256xf32, #tpu.memory_space<vmem>>, %arg10: memref<32x16xf32, #tpu.memory_space<vmem>>, %arg11: memref<32x16xf32, #tpu.memory_space<vmem>>) attributes {dimension_semantics = [#tpu.dimension_semantics<parallel>], iteration_bounds = array<i64: 2>, scalar_prefetch = 0 : i64, scratch_operands = 2 : i64, tpu.core_type = #tpu.core_type<tc>, window_params = [{transform_indices = @transform_0, window_bounds = array<i64: 32, 256>}, {pipeline_mode = #tpu.pipeline_mode<synchronous>, transform_indices = @transform_1, window_bounds = array<i64: 8, 32>}, {pipeline_mode = #tpu.pipeline_mode<synchronous>, transform_indices = @transform_2, window_bounds = array<i64: 8, 1>}, {pipeline_mode = #tpu.pipeline_mode<synchronous>, transform_indices = @transform_3, window_bounds = array<i64: 32, 8>}, {pipeline_mode = #tpu.pipeline_mode<synchronous>, transform_indices = @transform_4, window_bounds = array<i64: 32, 8>}, {pipeline_mode = #tpu.pipeline_mode<synchronous>, transform_indices = @transform_5, window_bounds = array<i64: 256, 32>}, {pipeline_mode = #tpu.pipeline_mode<synchronous>, transform_indices = @transform_6, window_bounds = array<i64: 16, 256>}, {pipeline_mode = #tpu.pipeline_mode<synchronous>, transform_indices = @transform_7, window_bounds = array<i64: 16, 256>}, {transform_indices = @transform_8, window_bounds = array<i64: 32, 256>}]} {
    %c0 = arith.constant 0 : index
    %c0_0 = arith.constant 0 : index
    %0 = vector.load %arg1[%c0, %c0_0] : memref<32x256xf32, #tpu.memory_space<vmem>>, vector<32x256xf32>
    %c0_1 = arith.constant 0 : index
    %c0_2 = arith.constant 0 : index
    %1 = vector.load %arg6[%c0_1, %c0_2] : memref<256x32xf32, #tpu.memory_space<vmem>>, vector<256x32xf32>
    %cst = arith.constant dense<0.000000e+00> : vector<32x32xf32>
    %2 = tpu.matmul %0, %1, %cst {dimension_numbers = #tpu.dot_dimension_numbers<[1], [0], [0], [1], [0, 0, 1, 1], [], []>} : vector<32x256xf32>, vector<256x32xf32>, vector<32x32xf32> -> vector<32x32xf32>
    %c0_3 = arith.constant 0 : index
    %c0_4 = arith.constant 0 : index
    %3 = vector.load %arg2[%c0_3, %c0_4] : memref<8x32xf32, #tpu.memory_space<vmem>>, vector<8x32xf32>
    %cst_5 = arith.constant dense<0.000000e+00> : vector<8x32xf32>
    %4 = tpu.matmul %3, %2, %cst_5 {dimension_numbers = #tpu.dot_dimension_numbers<[1], [0], [0], [1], [0, 0, 1, 1], [], []>} : vector<8x32xf32>, vector<32x32xf32>, vector<8x32xf32> -> vector<8x32xf32>
    %c0_6 = arith.constant 0 : index
    %c0_7 = arith.constant 0 : index
    %5 = vector.load %arg3[%c0_6, %c0_7] : memref<8x1xf32, #tpu.memory_space<vmem>>, vector<8x1xf32>
    %6 = vector.broadcast %5 : vector<8x1xf32> to vector<8x32xf32>
    %7 = arith.addf %4, %6 : vector<8x32xf32>
    %8 = arith.negf %7 : vector<8x32xf32>
    %9 = math.exp %8 : vector<8x32xf32>
    %cst_8 = arith.constant 1.000000e+00 : f32
    %10 = vector.broadcast %cst_8 : f32 to vector<8x32xf32>
    %11 = arith.addf %10, %9 : vector<8x32xf32>
    %12 = arith.divf %10, %11 : vector<8x32xf32>
    %13 = arith.mulf %7, %12 : vector<8x32xf32>
    %14 = vector.extract_strided_slice %13 {offsets = [0, 0], sizes = [8, 16], strides = [1, 1]} : vector<8x32xf32> to vector<8x16xf32>
    %15 = vector.extract_strided_slice %13 {offsets = [0, 16], sizes = [8, 16], strides = [1, 1]} : vector<8x32xf32> to vector<8x16xf32>
    %c0_9 = arith.constant 0 : index
    %c0_10 = arith.constant 0 : index
    %16 = vector.load %arg4[%c0_9, %c0_10] : memref<32x8xf32, #tpu.memory_space<vmem>>, vector<32x8xf32>
    %cst_11 = arith.constant dense<0.000000e+00> : vector<32x16xf32>
    %17 = tpu.matmul %16, %14, %cst_11 {dimension_numbers = #tpu.dot_dimension_numbers<[1], [0], [0], [1], [0, 0, 1, 1], [], []>} : vector<32x8xf32>, vector<8x16xf32>, vector<32x16xf32> -> vector<32x16xf32>
    %18 = arith.negf %17 : vector<32x16xf32>
    %19 = math.exp %18 : vector<32x16xf32>
    %cst_12 = arith.constant 1.000000e+00 : f32
    %20 = vector.broadcast %cst_12 : f32 to vector<32x16xf32>
    %21 = arith.addf %20, %19 : vector<32x16xf32>
    %22 = arith.divf %20, %21 : vector<32x16xf32>
    %c0_13 = arith.constant 0 : index
    %c0_14 = arith.constant 0 : index
    %23 = vector.load %arg10[%c0_13, %c0_14] : memref<32x16xf32, #tpu.memory_space<vmem>>, vector<32x16xf32>
    tpu.vector_store %arg10[%c0_13, %c0_14], %22 {strides = array<i32>} : memref<32x16xf32, #tpu.memory_space<vmem>>, vector<32x16xf32>,
    %c0_15 = arith.constant 0 : index
    %c0_16 = arith.constant 0 : index
    %24 = vector.load %arg5[%c0_15, %c0_16] : memref<32x8xf32, #tpu.memory_space<vmem>>, vector<32x8xf32>
    %cst_17 = arith.constant dense<0.000000e+00> : vector<32x16xf32>
    %25 = tpu.matmul %24, %15, %cst_17 {dimension_numbers = #tpu.dot_dimension_numbers<[1], [0], [0], [1], [0, 0, 1, 1], [], []>} : vector<32x8xf32>, vector<8x16xf32>, vector<32x16xf32> -> vector<32x16xf32>
    %26 = arith.negf %25 : vector<32x16xf32>
    %27 = math.exp %26 : vector<32x16xf32>
    %cst_18 = arith.constant 1.000000e+00 : f32
    %28 = vector.broadcast %cst_18 : f32 to vector<32x16xf32>
    %29 = arith.addf %28, %27 : vector<32x16xf32>
    %30 = arith.divf %28, %29 : vector<32x16xf32>
    %c0_19 = arith.constant 0 : index
    %c0_20 = arith.constant 0 : index
    %31 = vector.load %arg11[%c0_19, %c0_20] : memref<32x16xf32, #tpu.memory_space<vmem>>, vector<32x16xf32>
    tpu.vector_store %arg11[%c0_19, %c0_20], %30 {strides = array<i32>} : memref<32x16xf32, #tpu.memory_space<vmem>>, vector<32x16xf32>,
    %c0_21 = arith.constant 0 : index
    %c0_22 = arith.constant 0 : index
    %32 = vector.load %arg10[%c0_21, %c0_22] : memref<32x16xf32, #tpu.memory_space<vmem>>, vector<32x16xf32>
    %c0_23 = arith.constant 0 : index
    %c0_24 = arith.constant 0 : index
    %33 = vector.load %arg11[%c0_23, %c0_24] : memref<32x16xf32, #tpu.memory_space<vmem>>, vector<32x16xf32>
    %c0_25 = arith.constant 0 : index
    %c0_26 = arith.constant 0 : index
    %34 = vector.load %arg7[%c0_25, %c0_26] : memref<16x256xf32, #tpu.memory_space<vmem>>, vector<16x256xf32>
    %cst_27 = arith.constant dense<0.000000e+00> : vector<32x256xf32>
    %35 = tpu.matmul %32, %34, %cst_27 {dimension_numbers = #tpu.dot_dimension_numbers<[1], [0], [0], [1], [0, 0, 1, 1], [], []>} : vector<32x16xf32>, vector<16x256xf32>, vector<32x256xf32> -> vector<32x256xf32>
    %c0_28 = arith.constant 0 : index
    %c0_29 = arith.constant 0 : index
    %36 = vector.load %arg8[%c0_28, %c0_29] : memref<16x256xf32, #tpu.memory_space<vmem>>, vector<16x256xf32>
    %cst_30 = arith.constant dense<0.000000e+00> : vector<32x256xf32>
    %37 = tpu.matmul %33, %36, %cst_30 {dimension_numbers = #tpu.dot_dimension_numbers<[1], [0], [0], [1], [0, 0, 1, 1], [], []>} : vector<32x16xf32>, vector<16x256xf32>, vector<32x256xf32> -> vector<32x256xf32>
    %38 = arith.mulf %35, %37 : vector<32x256xf32>
    %c0_31 = arith.constant 0 : index
    %c0_32 = arith.constant 0 : index
    %39 = vector.load %arg1[%c0_31, %c0_32] : memref<32x256xf32, #tpu.memory_space<vmem>>, vector<32x256xf32>
    %40 = arith.mulf %39, %38 : vector<32x256xf32>
    %c0_33 = arith.constant 0 : index
    %c0_34 = arith.constant 0 : index
    %41 = vector.load %arg9[%c0_33, %c0_34] : memref<32x256xf32, #tpu.memory_space<vmem>>, vector<32x256xf32>
    tpu.vector_store %arg9[%c0_33, %c0_34], %40 {strides = array<i32>} : memref<32x256xf32, #tpu.memory_space<vmem>>, vector<32x256xf32>,
    return
  }
  func.func @transform_0(%arg0: i32) -> (i32, i32) {
    %c0_i32 = arith.constant 0 : i32
    %c0_i32_0 = arith.constant 0 : i32
    return %arg0, %c0_i32 : i32, i32
  }
  func.func @transform_1(%arg0: i32) -> (i32, i32) {
    %c0_i32 = arith.constant 0 : i32
    %c0_i32_0 = arith.constant 0 : i32
    %c0_i32_1 = arith.constant 0 : i32
    return %c0_i32, %c0_i32_0 : i32, i32
  }
  func.func @transform_2(%arg0: i32) -> (i32, i32) {
    %c0_i32 = arith.constant 0 : i32
    %c0_i32_0 = arith.constant 0 : i32
    %c0_i32_1 = arith.constant 0 : i32
    return %c0_i32, %c0_i32_0 : i32, i32
  }
  func.func @transform_3(%arg0: i32) -> (i32, i32) {
    %c0_i32 = arith.constant 0 : i32
    %c0_i32_0 = arith.constant 0 : i32
    %c0_i32_1 = arith.constant 0 : i32
    return %c0_i32, %c0_i32_0 : i32, i32
  }
  func.func @transform_4(%arg0: i32) -> (i32, i32) {
    %c0_i32 = arith.constant 0 : i32
    %c0_i32_0 = arith.constant 0 : i32
    %c0_i32_1 = arith.constant 0 : i32
    return %c0_i32, %c0_i32_0 : i32, i32
  }
  func.func @transform_5(%arg0: i32) -> (i32, i32) {
    %c0_i32 = arith.constant 0 : i32
    %c0_i32_0 = arith.constant 0 : i32
    %c0_i32_1 = arith.constant 0 : i32
    return %c0_i32, %c0_i32_0 : i32, i32
  }
  func.func @transform_6(%arg0: i32) -> (i32, i32) {
    %c0_i32 = arith.constant 0 : i32
    %c0_i32_0 = arith.constant 0 : i32
    %c0_i32_1 = arith.constant 0 : i32
    return %c0_i32, %c0_i32_0 : i32, i32
  }
  func.func @transform_7(%arg0: i32) -> (i32, i32) {
    %c0_i32 = arith.constant 0 : i32
    %c0_i32_0 = arith.constant 0 : i32
    %c0_i32_1 = arith.constant 0 : i32
    return %c0_i32, %c0_i32_0 : i32, i32
  }
  func.func @transform_8(%arg0: i32) -> (i32, i32) {
    %c0_i32 = arith.constant 0 : i32
    %c0_i32_0 = arith.constant 0 : i32
    return %arg0, %c0_i32 : i32, i32
  }
}

</mosaic_0001>

<bundles_post_ra>
// kernel: tpu_custom_call.1
= control target key start
LH: loop header
LB: loop body
LE: loop exit
PB: predicated region body
PF: predicated region fallthrough
CT: control target
= control target key end

     0   :  { %13 = vsyncpa [#allocation5], 0  ;;  %s1543_s0 = inlined_call_operand.vmem [shape: f32[64,256], index: 0, kind: input, shape index: {}]   ;;  %s1544_s1 = inlined_call_operand.vmem [shape: f32[8,32], index: 1, kind: input, shape index: {}]   ;;  %s1545_s2 = inlined_call_operand.vmem [shape: f32[8,1], index: 2, kind: input, shape index: {}]   ;;  %s1546_s3 = inlined_call_operand.vmem [shape: f32[32,8], index: 3, kind: input, shape index: {}]   ;;  %s1547_s4 = inlined_call_operand.vmem [shape: f32[32,8], index: 4, kind: input, shape index: {}]   ;;  %s1548_s5 = inlined_call_operand.vmem [shape: f32[256,32], index: 5, kind: input, shape index: {}]   ;;  %s1549_s6 = inlined_call_operand.vmem [shape: f32[16,256], index: 6, kind: input, shape index: {}]   ;;  %s1550_s7 = inlined_call_operand.vmem [shape: f32[16,256], index: 7, kind: input, shape index: {}]   ;;  %s1551_s8 = inlined_call_operand.hbm [shape: f32[64,256], index: 8, kind: output, shape index: {}]  }
   0x1   :  { %15 = vsyncpa [#allocation5 + $0x1], 0  ;;  %s1230_s27 = smov 0   ;;  %s1232_s28 = smov 0  }
   0x2   :  { %s1234_s29 = smov 0   ;;  %s1236_s30 = smov 0  }
   0x3 LB: > { %s1251_s9 = sadd.s32 4294967295, %s1179_s30   ;;  %s982_s10 = sadd.s32 4294967294, %s1179_s30   ;;  %s1179_s30 = sphi %s1236_s30, %s1557_s30   ;;  %s1175_s29 = sphi %s1234_s29, %s1556_s29   ;;  %s1171_s28 = sphi %s1232_s28, %s1555_s28   ;;  %s1167_s27 = sphi %s1230_s27, %s1554_s27  }
   0x4   : > { %s1255_s11 = sadd.s32 1, %s1179_s30   ;;  %s201_s12 = sadd.s32 1, %s1175_s29 }
   0x5   : > { %s198_s13 = ssub.s32 %s1179_s30, %s1255_s11  ;;  %p211_p0 = scmp.ne.s32.totalorder %s1175_s29, %s1171_s28 }
   0x6   : > { %p199_p1 = scmp.eq.s32.totalorder %s198_s13, 0  ;;  %p212_p2 = scmp.eq.s32.totalorder %s1251_s9, 1 }
   0x7   : > { %p217_p3 = scmp.ne.s32.totalorder %s1171_s28, %s1167_s27  ;;  %p218_p4 = scmp.eq.s32.totalorder %s982_s10, 1 }
   0x8   : > { %s1266_s14 = scalar_select %p199_p1, %s1175_s29, %s201_s12  }
   0x9   : > { %p1268_p5 = por %p212_p2, %p211_p0  ;;  %p1272_p6 = por %p218_p4, %p217_p3 }
   0xa   : > { %p985_p7 = scmp.ge.s32.totalorder %s1179_s30, 1  ;;  %p267_p8 = scmp.lt.s32.totalorder %s1179_s30, 3 }
   0xc   : > { %p268_p9 = pnand %p985_p7, %p267_p8 }
   0xd   : > { %s987_s23 = sshll.u32 (!%p268_p9), %s1251_s9, 2  ;;  %s1182_s13 = smov (!%p268_p9), 112  }
   0xe   : > { %271 = sbr.rel (%p268_p9) target bundleno = 831 (0x33f), region = 52  ;;  %p303_p10 = scmp.lt.s32.totalorder (!%p268_p9), %s987_s23, 7 }
   0xf   : > { %s299_s21 = sand.u32 (!%p268_p9), 1, %s1171_s28   ;;  %s1032_s24 = sshll.u32 (!%p268_p9), %s1251_s9, 6 }
  0x10   : > { %s986_s22 = sshll.u32 (!%p268_p9), %s299_s21, 6  ;;  %s916_s10 = scalar_lea.hbm (!%p268_p9), %s1551_s8, %s1032_s24 }
  0x11   : > { %s904_s9 = scalar_lea.sflag (!%p268_p9), [#allocation5], %s299_s21 }
  0x13   : > { %v333_v0 = vld [vmem:[%s1548_s5 + $0x78] sm:$0xff]  ;;  %v332_v2 = vld [vmem:[%s1548_s5 + $0x70] sm:$0xff]  ;;  %v331_v4 = vld [vmem:[%s1548_s5 + $0x68] sm:$0xff]  ;;  %s1559_s23 = smov (!%p303_p10, %s987_s23), 7  ;;  %v1181_v43 = vmov 0   ;;  %vm415_vm0 = vcmask 261120  }
  0x14   : > { %v349_v1 = vld [vmem:[%s1548_s5 + $0xf8] sm:$0xff]  ;;  %350 = vmatpush.msra.mxu0 %v333_v0  ;;  %v348_v3 = vld [vmem:[%s1548_s5 + $0xf0] sm:$0xff]  ;;  %v347_v5 = vld [vmem:[%s1548_s5 + $0xe8] sm:$0xff]  ;;  %s1030_s19 = sshll.u32 %s1559_s23, 4  ;;  %1080 = vset.pattern.permute.xlu0 %v1181_v43  ;;  %vm463_vm5 = vcmask 64512   ;;  %vm581_vm10 = vcmask 130048  }
  0x15   : > { %379 = vmatpush.msra.mxu1 %v349_v1  ;;  %v330_v6 = vld [vmem:[%s1548_s5 + $0x60] sm:$0xff]  ;;  %v329_v8 = vld [vmem:[%s1548_s5 + $0x58] sm:$0xff]  ;;  %v328_v10 = vld [vmem:[%s1548_s5 + $0x50] sm:$0xff]  ;;  %s307_s17 = scalar_lea.vmem %s1543_s0, %s1030_s19  ;;  %s1493_s19 = scalar_lea.vmem [#allocation4], %s986_s22 }
  0x16   : > { %351 = vmatpush.msra.mxu0 %v332_v2  ;;  %v346_v7 = vld [vmem:[%s1548_s5 + $0xe0] sm:$0xff]  ;;  %v345_v9 = vld [vmem:[%s1548_s5 + $0xd8] sm:$0xff]  ;;  %v344_v11 = vld [vmem:[%s1548_s5 + $0xd0] sm:$0xff]  ;;  %s917_s12 = sshll.u32 %s1493_s19, 4  ;;  %s1137_s22 = scalar_lea.hbm %s1551_s8, 128  ;;  %s918_s12 = int_to_ptr.vmem [resolvable:$true] %s917_s12 }
  0x17   : > { %380 = vmatpush.msra.mxu1 %v348_v3  ;;  %v327_v12 = vld [vmem:[%s1548_s5 + $0x48] sm:$0xff]  ;;  %v326_v14 = vld [vmem:[%s1548_s5 + $0x40] sm:$0xff]  ;;  %v325_v16 = vld [vmem:[%s1548_s5 + $0x38] sm:$0xff] }
  0x18   : > { %352 = vmatpush.msra.mxu0 %v331_v4  ;;  %v343_v13 = vld [vmem:[%s1548_s5 + $0xc8] sm:$0xff]  ;;  %v342_v15 = vld [vmem:[%s1548_s5 + $0xc0] sm:$0xff]  ;;  %v341_v17 = vld [vmem:[%s1548_s5 + $0xb8] sm:$0xff] }
  0x19   : > { %381 = vmatpush.msra.mxu1 %v347_v5  ;;  %v324_v18 = vld [vmem:[%s1548_s5 + $0x30] sm:$0xff]  ;;  %v323_v20 = vld [vmem:[%s1548_s5 + $0x28] sm:$0xff]  ;;  %v322_v22 = vld [vmem:[%s1548_s5 + $0x20] sm:$0xff] }
  0x1a   : > { %353 = vmatpush.msra.mxu0 %v330_v6  ;;  %v340_v19 = vld [vmem:[%s1548_s5 + $0xb0] sm:$0xff]  ;;  %v339_v21 = vld [vmem:[%s1548_s5 + $0xa8] sm:$0xff]  ;;  %v338_v23 = vld [vmem:[%s1548_s5 + $0xa0] sm:$0xff] }
  0x1b   : > { %382 = vmatpush.msra.mxu1 %v346_v7  ;;  %v321_v24 = vld [vmem:[%s1548_s5 + $0x18] sm:$0xff]  ;;  %v320_v26 = vld [vmem:[%s1548_s5 + $0x10] sm:$0xff]  ;;  %v319_v28 = vld [vmem:[%s1548_s5 + $0x8] sm:$0xff] }
  0x1c   : > { %354 = vmatpush.msra.mxu0 %v329_v8  ;;  %v337_v25 = vld [vmem:[%s1548_s5 + $0x98] sm:$0xff]  ;;  %v336_v27 = vld [vmem:[%s1548_s5 + $0x90] sm:$0xff]  ;;  %v335_v29 = vld [vmem:[%s1548_s5 + $0x88] sm:$0xff] }
  0x1d   : > { %383 = vmatpush.msra.mxu1 %v345_v9  ;;  %v318_v30 = vld [vmem:[%s1548_s5] sm:$0xff]  ;;  %v1380_v33 = vld [vmem:[%s307_s17 + $0x8] sm:$0xff]  ;;  %v1384_v34 = vld [vmem:[%s307_s17 + $0x10] sm:$0xff] }
  0x1e   : > { %355 = vmatpush.msra.mxu0 %v328_v10  ;;  %v334_v31 = vld [vmem:[%s1548_s5 + $0x80] sm:$0xff]  ;;  %v1386_v35 = vld [vmem:[%s307_s17 + $0x18] sm:$0xff]  ;;  %v1392_v37 = vld [vmem:[%s307_s17 + $0x28] sm:$0xff] }
  0x1f   : > { %384 = vmatpush.msra.mxu1 %v344_v11  ;;  %v1378_v32 = vld [vmem:[%s307_s17] sm:$0xff]  ;;  %v1396_v38 = vld [vmem:[%s307_s17 + $0x30] sm:$0xff]  ;;  %v1398_v39 = vld [vmem:[%s307_s17 + $0x38] sm:$0xff] }
  0x20   : > { %356 = vmatpush.msra.mxu0 %v327_v12  ;;  %v1390_v36 = vld [vmem:[%s307_s17 + $0x20] sm:$0xff]  ;;  %v460_v9 = vld [vmem:[%s1546_s3 + $0x8] sm:$0xff]  ;;  %v461_v10 = vld [vmem:[%s1546_s3 + $0x10] sm:$0xff] }
  0x21   : > { %385 = vmatpush.msra.mxu1 %v343_v13  ;;  %v409_v42 = vld [vmem:[%s1545_s2] sm:$0xff]  ;;  %v462_v11 = vld [vmem:[%s1546_s3 + $0x18] sm:$0xff] }
  0x22   : > { %357 = vmatpush.msra.mxu0 %v326_v14  ;;  %412 = vperm.xlu0 %1080, %v409_v42   ;;  %v408_v54 = vld [vmem:[%s1544_s1] sm:$0xff]  ;;  %v587_v14 = vld [vmem:[%s1547_s4 + $0x8] sm:$0xff] }
  0x23   : > { %386 = vmatpush.msra.mxu1 %v342_v15  ;;  %v459_v8 = vld [vmem:[%s1546_s3] sm:$0xff]  ;;  %v588_v15 = vld [vmem:[%s1547_s4 + $0x10] sm:$0xff] }
  0x24   : > { %358 = vmatpush.msra.mxu0 %v325_v16  ;;  %v586_v12 = vld [vmem:[%s1547_s4] sm:$0xff] }
  0x25   : > { %387 = vmatpush.msra.mxu1 %v341_v17 }
  0x26   : > { %359 = vmatpush.msra.mxu0 %v324_v18  ;;  %v589_v18 = vld [vmem:[%s1547_s4 + $0x18] sm:$0xff] }
  0x27   : > { %388 = vmatpush.msra.mxu1 %v340_v19 }
  0x28   : > { %360 = vmatpush.msra.mxu0 %v323_v20 }
  0x29   : > { %389 = vmatpush.msra.mxu1 %v339_v21 }
  0x2a   : > { %361 = vmatpush.msra.mxu0 %v322_v22 }
  0x2b   : > { %390 = vmatpush.msra.mxu1 %v338_v23 }
  0x2c   : > { %362 = vmatpush.msra.mxu0 %v321_v24 }
  0x2d   : > { %391 = vmatpush.msra.mxu1 %v337_v25 }
  0x2e   : > { %363 = vmatpush.msra.mxu0 %v320_v26 }
  0x2f   : > { %392 = vmatpush.msra.mxu1 %v336_v27 }
  0x30   : > { %364 = vmatpush.msra.mxu0 %v319_v28 }
  0x31   : > { %393 = vmatpush.msra.mxu1 %v335_v29 }
  0x32   : > { %365 = vmatpush.msra.mxu0 %v318_v30 }
  0x33   : > { %394 = vmatpush.msra.mxu1 %v334_v31  ;;  %366 = vmatmul.f32.vlgmr.msra.gmra.mxu0 %v1378_v32 }
  0x34   : > { %395 = vmatmul.f32.vlgmr.msra.gmra.mxu1 %v1380_v33 }
  0x3b   : > { %369 = vmatmul.f32.gmra.mxu0 %v1384_v34 }
  0x3c   : > { %398 = vmatmul.f32.gmra.mxu1 %v1386_v35 }
  0x43   : > { %372 = vmatmul.f32.gmra.mxu0 %v1390_v36 }
  0x44   : > { %401 = vmatmul.f32.gmra.mxu1 %v1392_v37 }
  0x4b   : > { %375 = vmatmul.f32.gmra.mxu0 %v1396_v38 }
  0x4c   : > { %404 = vmatmul.f32.gmra.mxu1 %v1398_v39 }
  0x94   : > { %v413_v55 = vpop.permute.xlu0 %412 }
  0xb0   : > { %v367_v40 = vpop.f32.mrf.mxu0 }
  0xb1   : > { %v396_v41 = vpop.f32.mrf.mxu1 }
  0xb2   : > { %v397_v53 = vadd.f32 %v396_v41, %v367_v40 }
  0xb8   : > { %v370_v44 = vpop.f32.mrf.mxu0 }
  0xb9   : > { %v399_v45 = vpop.f32.mrf.mxu1 }
  0xba   : > { %v400_v52 = vadd.f32 %v399_v45, %v370_v44 }
  0xc0   : > { %v373_v46 = vpop.f32.mrf.mxu0 }
  0xc1   : > { %v402_v47 = vpop.f32.mrf.mxu1 }
  0xc2   : > { %v403_v51 = vadd.f32 %v402_v47, %v373_v46 }
  0xc8   : > { %v376_v48 = vpop.f32.mrf.mxu0 }
  0xc9   : > { %v405_v49 = vpop.f32.mrf.mxu1 }
  0xca   : > { %v406_v50 = vadd.f32 %v405_v49, %v376_v48 }
  0xcc   : > { %431 = vmatpush.msra.mxu2 %v406_v50 }
  0xce   : > { %432 = vmatpush.msra.mxu2 %v403_v51 }
  0xd0   : > { %433 = vmatpush.msra.mxu2 %v400_v52 }
  0xd2   : > { %434 = vmatpush.msra.mxu2 %v397_v53 }
  0xd3   : > { %990 = vmatmul.msk.f32.vlgmr.msra.gmra.mxu2 %vm415_vm0, %v408_v54 }
 0x156   : > { %v436_v56 = vpop.f32.mrf.mxu2 }
 0x157   : > { %v437_v57 = vadd.f32 %v436_v56, %v413_v55 }
 0x159   : > { %v991_v58 = vmul.f32 -1.442695, %v437_v57 }
 0x15b   : > { %1081 = vpow2.f32 %v991_v58 }
 0x161   : > { %v1082_v59 = vpop.eup %1081 }
 0x162   : > { %v442_v60 = vadd.f32 1.0, %v1082_v59 }
 0x164   : > { %1083 = vrcp.f32 %v442_v60  ;;  %v454_v0 = vand.u32 2147483648, %v442_v60  ;;  %v452_v2 = vand.u32 2147483647, %v442_v60  ;;  %vm448_vm2 = vweird.f32 %v442_v60 }
 0x166   : > { %v455_v4 = vor.u32 1.1754944e-38, %v454_v0  ;;  %vm453_vm4 = vcmp.eq.f32.partialorder %v452_v2, 8.507059e+37  ;;  %v724_v2 = vld [vmem:[%s1549_s6 + $0x8] sm:$0xff] }
 0x16a   : > { %v1084_v61 = vpop.eup %1083 }
 0x16b   : > { %v444_v62 = vmul.f32 %v1084_v61, %v442_v60  ;;  %vm449_vm1 = vweird.f32 %v1084_v61  ;;  %v725_v60 = vld [vmem:[%s1549_s6 + $0x10] sm:$0xff] }
 0x16c   : > { %vm450_vm3 = vmor %vm448_vm2, %vm449_vm1 }
 0x16d   : > { %v445_v63 = vsub.f32 1.0, %v444_v62 }
 0x16f   : > { %v446_v1 = vmul.f32 %v1084_v61, %v445_v63  ;;  %v726_v63 = vld [vmem:[%s1549_s6 + $0x18] sm:$0xff] }
 0x171   : > { %v447_v3 = vadd.f32 %v1084_v61, %v446_v1  ;;  %v723_v1 = vld [vmem:[%s1549_s6] sm:$0xff] }
 0x173   : > { %v451_v5 = vsel %vm450_vm3, %v1084_v61, %v447_v3 }
 0x174   : > { %v456_v6 = vsel %vm453_vm4, %v455_v4, %v451_v5 }
 0x175   : > { %v458_v7 = vmul.f32 %v456_v6, %v437_v57 }
 0x177   : > { %591 = vrot.lane.b32.xlu0 %v458_v7, %s1182_s13  ;;  %491 = vmatpush.msra.mxu3 %v458_v7  ;;  %s919_s13 = sshll.u32 %s916_s10, 4  ;;  %s920_s13 = int_to_ptr.hbm [resolvable:$true] %s919_s13 }
 0x178   : > { %992 = vmatmul.msk.f32.vlgmr.msra.gmra.mxu3 %vm463_vm5, %v459_v8  ;;  %s1131_s23 = sshra.s32 %s920_s13, 4  ;;  %s1132_s23 = int_to_ptr.hbm [resolvable:$true] %s1131_s23 }
 0x179   : > { %753 = vmatpush.msrb.mxu3 %v725_v60  ;;  %s1133_s17 = scalar_lea.hbm %s1132_s23, 64  ;;  %p1138_p0 = scmp.lt.s32.totalorder %s1132_s23, %s1551_s8 }
 0x17a   : > { %p1134_p11 = scmp.ne.s32.totalorder %s1132_s23, %s1133_s17  ;;  %p1139_p1 = scmp.lt.s32.totalorder %s1137_s22, %s1133_s17 }
 0x17b   : > { %754 = vmatpush.msrb.mxu3 %v723_v1 }
 0x17c   : > { %p1135_p12 = pnand %p1134_p11, %p1268_p5  ;;  %p1140_p2 = por %p1139_p1, %p1138_p0 }
 0x17e   : > { %p1136_p13 = pneg %p1135_p12 }
 0x180   : > { %993 = vmatmul.msk.f32.gmra.mxu3 %vm463_vm5, %v460_v9  ;;  %p1141_p3 = pnand %p1140_p2, %p1136_p13 }
 0x188   : > { %994 = vmatmul.msk.f32.gmra.mxu3 %vm463_vm5, %v461_v10 }
 0x190   : > { %995 = vmatmul.msk.f32.gmra.mxu3 %vm463_vm5, %v462_v11 }
 0x1e9   : > { %v592_v13 = vpop.permute.xlu0 %591 }
 0x1ea   : > { %621 = vmatpush.msrb.mxu2 %v592_v13 }
 0x1eb   : > { %1000 = vmatmul.msk.f32.vlgmr.msrb.gmra.mxu2 %vm463_vm5, %v586_v12 }
 0x1ec   : > { %782 = vmatpush.msra.mxu2 %v726_v63 }
 0x1ee   : > { %783 = vmatpush.msra.mxu2 %v724_v2 }
 0x1f3   : > { %1001 = vmatmul.msk.f32.gmra.mxu2 %vm463_vm5, %v587_v14 }
 0x1fb   : > { %1002 = vmatmul.msk.f32.gmra.mxu2 %vm463_vm5, %v588_v15  ;;  %v493_v16 = vpop.f32.mrf.mxu3 }
 0x1fc   : > { %v996_v17 = vmul.f32 -1.442695, %v493_v16 }
 0x1fe   : > { %1085 = vpow2.f32 %v996_v17 }
 0x203   : > { %1003 = vmatmul.msk.f32.gmra.mxu2 %vm463_vm5, %v589_v18  ;;  %v496_v19 = vpop.f32.mrf.mxu3 }
 0x204   : > { %v1086_v20 = vpop.eup %1085  ;;  %v997_v21 = vmul.f32 -1.442695, %v496_v19 }
 0x205   : > { %v517_v22 = vadd.f32 1.0, %v1086_v20 }
 0x206   : > { %1087 = vpow2.f32 %v997_v21 }
 0x207   : > { %1089 = vrcp.f32 %v517_v22  ;;  %v532_v27 = vand.u32 2147483648, %v517_v22  ;;  %vm526_vm6 = vweird.f32 %v517_v22  ;;  %v530_v29 = vand.u32 2147483647, %v517_v22 }
 0x209   : > { %v533_v31 = vor.u32 1.1754944e-38, %v532_v27  ;;  %vm531_vm9 = vcmp.eq.f32.partialorder %v530_v29, 8.507059e+37  ;;  %v800_v27 = vld [vmem:[%s1550_s7 + $0x18] sm:$0xff]  ;;  %v798_v29 = vld [vmem:[%s1550_s7 + $0x8] sm:$0xff] }
 0x20a   : > { %856 = vmatpush.msrb.mxu1 %v800_v27 }
 0x20b   : > { %v499_v53 = vpop.f32.mrf.mxu3 }
 0x20c   : > { %v1088_v23 = vpop.eup %1087  ;;  %v998_v54 = vmul.f32 -1.442695, %v499_v53  ;;  %857 = vmatpush.msrb.mxu1 %v798_v29 }
 0x20d   : > { %v1090_v24 = vpop.eup %1089  ;;  %v518_v25 = vadd.f32 1.0, %v1088_v23 }
 0x20e   : > { %v522_v26 = vmul.f32 %v1090_v24, %v517_v22  ;;  %vm527_vm7 = vweird.f32 %v1090_v24 }
 0x20f   : > { %1091 = vrcp.f32 %v518_v25  ;;  %vm528_vm8 = vmor %vm526_vm6, %vm527_vm7  ;;  %v547_v45 = vand.u32 2147483648, %v518_v25  ;;  %vm541_vm11 = vweird.f32 %v518_v25  ;;  %v545_v47 = vand.u32 2147483647, %v518_v25 }
 0x210   : > { %v523_v28 = vsub.f32 1.0, %v522_v26  ;;  %1093 = vpow2.f32 %v998_v54  ;;  %v799_v26 = vld [vmem:[%s1550_s7 + $0x10] sm:$0xff] }
 0x211   : > { %v548_v49 = vor.u32 1.1754944e-38, %v547_v45  ;;  %vm546_vm14 = vcmp.eq.f32.partialorder %v545_v47, 8.507059e+37  ;;  %827 = vmatpush.msrb.mxu0 %v799_v26  ;;  %1033 = vmatpush.msra.mxu3 %v799_v26 }
 0x212   : > { %v524_v30 = vmul.f32 %v1090_v24, %v523_v28  ;;  %v797_v28 = vld [vmem:[%s1550_s7] sm:$0xff] }
 0x213   : > { %v502_v55 = vpop.f32.mrf.mxu3  ;;  %828 = vmatpush.msrb.mxu0 %v797_v28  ;;  %1034 = vmatpush.msra.mxu3 %v797_v28 }
 0x214   : > { %v525_v40 = vadd.f32 %v1090_v24, %v524_v30  ;;  %v999_v57 = vmul.f32 -1.442695, %v502_v55 }
 0x215   : > { %v1092_v41 = vpop.eup %1091 }
 0x216   : > { %v529_v42 = vsel %vm528_vm8, %v1090_v24, %v525_v40  ;;  %v537_v43 = vmul.f32 %v1092_v41, %v518_v25  ;;  %vm542_vm12 = vweird.f32 %v1092_v41  ;;  %v1094_v56 = vpop.eup %1093  ;;  %1095 = vpow2.f32 %v999_v57 }
 0x217   : > { %v534_v44 = vsel %vm531_vm9, %v533_v31, %v529_v42  ;;  %vm543_vm13 = vmor %vm541_vm11, %vm542_vm12  ;;  %v519_v58 = vadd.f32 1.0, %v1094_v56 }
 0x218   : > { %582 = vst.msk [vmem:[#allocation2] sm:$0xff] %vm581_vm10, %v534_v44  ;;  %v538_v46 = vsub.f32 1.0, %v537_v43 }
 0x219   : > { %1097 = vrcp.f32 %v519_v58  ;;  %v562_v6 = vand.u32 2147483648, %v519_v58  ;;  %vm556_vm15 = vweird.f32 %v519_v58  ;;  %v560_v8 = vand.u32 2147483647, %v519_v58 }
 0x21a   : > { %v539_v48 = vmul.f32 %v1092_v41, %v538_v46 }
 0x21b   : > { %v563_v10 = vor.u32 1.1754944e-38, %v562_v6  ;;  %vm561_vm2 = vcmp.eq.f32.partialorder %v560_v8, 8.507059e+37 }
 0x21c   : > { %v540_v50 = vadd.f32 %v1092_v41, %v539_v48  ;;  %v1096_v59 = vpop.eup %1095 }
 0x21d   : > { %v520_v62 = vadd.f32 1.0, %v1096_v59 }
 0x21e   : > { %v544_v51 = vsel %vm543_vm13, %v1092_v41, %v540_v50 }
 0x21f   : > { %v549_v52 = vsel %vm546_vm14, %v548_v49, %v544_v51  ;;  %v1098_v61 = vpop.eup %1097  ;;  %1099 = vrcp.f32 %v520_v62  ;;  %v715_v4 = vld [vmem:[#allocation2] sm:$0xff]  ;;  %v577_v17 = vand.u32 2147483648, %v520_v62  ;;  %vm571_vm3 = vweird.f32 %v520_v62 }
 0x220   : > { %583 = vst.msk [vmem:[#allocation2 + $0x8] sm:$0xff] %vm581_vm10, %v549_v52  ;;  %v552_v0 = vmul.f32 %v1098_v61, %v519_v58  ;;  %1008 = vmatmul.msk.f32.vlgmr.msrb.gmra.mxu3 %vm581_vm10, %v715_v4  ;;  %1012 = vmatmul.msk.f32.vlgmr.msra.gmra.mxu2 %vm581_vm10, %v715_v4  ;;  %vm557_vm0 = vweird.f32 %v1098_v61  ;;  %v575_v19 = vand.u32 2147483647, %v520_v62 }
 0x221   : > { %vm558_vm1 = vmor %vm556_vm15, %vm557_vm0  ;;  %v578_v20 = vor.u32 1.1754944e-38, %v577_v17  ;;  %1035 = vmatpush.msrb.mxu3 %v800_v27 }
 0x222   : > { %v553_v3 = vsub.f32 1.0, %v552_v0  ;;  %vm576_vm6 = vcmp.eq.f32.partialorder %v575_v19, 8.507059e+37 }
 0x223   : > { %1036 = vmatpush.msrb.mxu3 %v798_v29 }
 0x224   : > { %v554_v5 = vmul.f32 %v1098_v61, %v553_v3 }
 0x225   : > { %v1100_v9 = vpop.eup %1099 }
 0x226   : > { %v555_v7 = vadd.f32 %v1098_v61, %v554_v5  ;;  %v567_v12 = vmul.f32 %v1100_v9, %v520_v62  ;;  %vm572_vm4 = vweird.f32 %v1100_v9 }
 0x227   : > { %v716_v15 = vld [vmem:[#allocation2 + $0x8] sm:$0xff]  ;;  %vm573_vm5 = vmor %vm571_vm3, %vm572_vm4 }
 0x228   : > { %v559_v11 = vsel %vm558_vm1, %v1098_v61, %v555_v7  ;;  %v568_v14 = vsub.f32 1.0, %v567_v12  ;;  %1009 = vmatmul.msk.f32.gmra.mxu3 %vm581_vm10, %v716_v15  ;;  %1013 = vmatmul.msk.f32.gmra.mxu2 %vm581_vm10, %v716_v15 }
 0x229   : > { %v564_v13 = vsel %vm561_vm2, %v563_v10, %v559_v11 }
 0x22a   : > { %584 = vst.msk [vmem:[#allocation2 + $0x10] sm:$0xff] %vm581_vm10, %v564_v13  ;;  %v569_v16 = vmul.f32 %v1100_v9, %v568_v14 }
 0x22c   : > { %v570_v18 = vadd.f32 %v1100_v9, %v569_v16 }
 0x22e   : > { %v574_v21 = vsel %vm573_vm5, %v1100_v9, %v570_v18 }
 0x22f   : > { %v579_v22 = vsel %vm576_vm6, %v578_v20, %v574_v21 }
 0x230   : > { %585 = vst.msk [vmem:[#allocation2 + $0x18] sm:$0xff] %vm581_vm10, %v579_v22 }
 0x231   : > { %v717_v24 = vld [vmem:[#allocation2 + $0x10] sm:$0xff] }
 0x232   : > { %1010 = vmatmul.msk.f32.gmra.mxu3 %vm581_vm10, %v717_v24  ;;  %1014 = vmatmul.msk.f32.gmra.mxu2 %vm581_vm10, %v717_v24 }
 0x237   : > { %v718_v31 = vld [vmem:[#allocation2 + $0x18] sm:$0xff] }
 0x23a   : > { %1011 = vmatmul.msk.f32.gmra.mxu3 %vm581_vm10, %v718_v31  ;;  %1015 = vmatmul.msk.f32.gmra.mxu2 %vm581_vm10, %v718_v31 }
 0x26e   : > { %v623_v23 = vpop.f32.mrf.mxu2 }
 0x26f   : > { %v1004_v25 = vmul.f32 -1.442695, %v623_v23 }
 0x271   : > { %1101 = vpow2.f32 %v1004_v25 }
 0x276   : > { %v626_v30 = vpop.f32.mrf.mxu2 }
 0x277   : > { %v1102_v40 = vpop.eup %1101  ;;  %v1005_v41 = vmul.f32 -1.442695, %v626_v30 }
 0x278   : > { %v647_v42 = vadd.f32 1.0, %v1102_v40 }
 0x279   : > { %1103 = vpow2.f32 %v1005_v41 }
 0x27a   : > { %1105 = vrcp.f32 %v647_v42  ;;  %v662_v50 = vand.u32 2147483648, %v647_v42  ;;  %v660_v52 = vand.u32 2147483647, %v647_v42  ;;  %vm656_vm8 = vweird.f32 %v647_v42 }
 0x27c   : > { %v663_v58 = vor.u32 1.1754944e-38, %v662_v50  ;;  %vm661_vm11 = vcmp.eq.f32.partialorder %v660_v52, 8.507059e+37 }
 0x27e   : > { %v629_v43 = vpop.f32.mrf.mxu2 }
 0x27f   : > { %v1104_v44 = vpop.eup %1103  ;;  %v1006_v45 = vmul.f32 -1.442695, %v629_v43 }
 0x280   : > { %v1106_v46 = vpop.eup %1105  ;;  %v648_v47 = vadd.f32 1.0, %v1104_v44 }
 0x281   : > { %v652_v48 = vmul.f32 %v1106_v46, %v647_v42  ;;  %1107 = vpow2.f32 %v1006_v45  ;;  %vm657_vm7 = vweird.f32 %v1106_v46 }
 0x282   : > { %1109 = vrcp.f32 %v648_v47  ;;  %vm658_vm9 = vmor %vm656_vm8, %vm657_vm7  ;;  %v677_v0 = vand.u32 2147483648, %v648_v47  ;;  %v675_v2 = vand.u32 2147483647, %v648_v47  ;;  %vm671_vm13 = vweird.f32 %v648_v47 }
 0x283   : > { %v653_v49 = vsub.f32 1.0, %v652_v48 }
 0x284   : > { %v678_v6 = vor.u32 1.1754944e-38, %v677_v0  ;;  %vm676_vm15 = vcmp.eq.f32.partialorder %v675_v2, 8.507059e+37 }
 0x285   : > { %v654_v51 = vmul.f32 %v1106_v46, %v653_v49 }
 0x286   : > { %v632_v53 = vpop.f32.mrf.mxu2 }
 0x287   : > { %v1108_v54 = vpop.eup %1107  ;;  %v655_v55 = vadd.f32 %v1106_v46, %v654_v51  ;;  %v1007_v56 = vmul.f32 -1.442695, %v632_v53 }
 0x288   : > { %v1110_v57 = vpop.eup %1109  ;;  %v649_v59 = vadd.f32 1.0, %v1108_v54 }
 0x289   : > { %v659_v60 = vsel %vm658_vm9, %v1106_v46, %v655_v55  ;;  %v667_v61 = vmul.f32 %v1110_v57, %v648_v47  ;;  %1111 = vpow2.f32 %v1007_v56  ;;  %vm672_vm12 = vweird.f32 %v1110_v57 }
 0x28a   : > { %v664_v62 = vsel %vm661_vm11, %v663_v58, %v659_v60  ;;  %1113 = vrcp.f32 %v649_v59  ;;  %vm673_vm14 = vmor %vm671_vm13, %vm672_vm12  ;;  %v692_v13 = vand.u32 2147483648, %v649_v59  ;;  %v690_v15 = vand.u32 2147483647, %v649_v59 }
 0x28b   : > { %711 = vst.msk [vmem:[#allocation3] sm:$0xff] %vm581_vm10, %v664_v62  ;;  %v668_v63 = vsub.f32 1.0, %v667_v61  ;;  %vm686_vm1 = vweird.f32 %v649_v59 }
 0x28c   : > { %v693_v18 = vor.u32 1.1754944e-38, %v692_v13  ;;  %vm691_vm3 = vcmp.eq.f32.partialorder %v690_v15, 8.507059e+37 }
 0x28d   : > { %v669_v1 = vmul.f32 %v1110_v57, %v668_v63 }
 0x28f   : > { %v1112_v3 = vpop.eup %1111  ;;  %v670_v4 = vadd.f32 %v1110_v57, %v669_v1 }
 0x290   : > { %v1114_v5 = vpop.eup %1113  ;;  %v650_v7 = vadd.f32 1.0, %v1112_v3 }
 0x291   : > { %v674_v8 = vsel %vm673_vm14, %v1110_v57, %v670_v4  ;;  %v682_v9 = vmul.f32 %v1114_v5, %v649_v59  ;;  %vm687_vm0 = vweird.f32 %v1114_v5 }
 0x292   : > { %v679_v10 = vsel %vm676_vm15, %v678_v6, %v674_v8  ;;  %1115 = vrcp.f32 %v650_v7  ;;  %v719_v11 = vld [vmem:[#allocation3] sm:$0xff]  ;;  %vm688_vm2 = vmor %vm686_vm1, %vm687_vm0  ;;  %v707_v24 = vand.u32 2147483648, %v650_v7  ;;  %v705_v26 = vand.u32 2147483647, %v650_v7 }
 0x293   : > { %712 = vst.msk [vmem:[#allocation3 + $0x8] sm:$0xff] %vm581_vm10, %v679_v10  ;;  %v683_v12 = vsub.f32 1.0, %v682_v9  ;;  %1016 = vmatmul.msk.f32.vlgmr.msrb.gmra.mxu0 %vm581_vm10, %v719_v11  ;;  %1020 = vmatmul.msk.f32.vlgmr.msrb.gmra.mxu1 %vm581_vm10, %v719_v11  ;;  %vm701_vm5 = vweird.f32 %v650_v7 }
 0x294   : > { %v708_v28 = vor.u32 1.1754944e-38, %v707_v24  ;;  %vm706_vm7 = vcmp.eq.f32.partialorder %v705_v26, 8.507059e+37 }
 0x295   : > { %v684_v14 = vmul.f32 %v1114_v5, %v683_v12 }
 0x297   : > { %v685_v16 = vadd.f32 %v1114_v5, %v684_v14 }
 0x298   : > { %v1116_v17 = vpop.eup %1115 }
 0x299   : > { %v689_v19 = vsel %vm688_vm2, %v1114_v5, %v685_v16  ;;  %v697_v20 = vmul.f32 %v1116_v17, %v650_v7  ;;  %vm702_vm4 = vweird.f32 %v1116_v17 }
 0x29a   : > { %v694_v21 = vsel %vm691_vm3, %v693_v18, %v689_v19  ;;  %v720_v22 = vld [vmem:[#allocation3 + $0x8] sm:$0xff]  ;;  %vm703_vm6 = vmor %vm701_vm5, %vm702_vm4 }
 0x29b   : > { %713 = vst.msk [vmem:[#allocation3 + $0x10] sm:$0xff] %vm581_vm10, %v694_v21  ;;  %v698_v23 = vsub.f32 1.0, %v697_v20  ;;  %1017 = vmatmul.msk.f32.gmra.mxu0 %vm581_vm10, %v720_v22  ;;  %1021 = vmatmul.msk.f32.gmra.mxu1 %vm581_vm10, %v720_v22 }
 0x29d   : > { %v699_v25 = vmul.f32 %v1116_v17, %v698_v23 }
 0x29f   : > { %v700_v27 = vadd.f32 %v1116_v17, %v699_v25 }
 0x2a1   : > { %v704_v29 = vsel %vm703_vm6, %v1116_v17, %v700_v27 }
 0x2a2   : > { %v709_v30 = vsel %vm706_vm7, %v708_v28, %v704_v29  ;;  %v721_v31 = vld [vmem:[#allocation3 + $0x10] sm:$0xff] }
 0x2a3   : > { %714 = vst.msk [vmem:[#allocation3 + $0x18] sm:$0xff] %vm581_vm10, %v709_v30  ;;  %1018 = vmatmul.msk.f32.gmra.mxu0 %vm581_vm10, %v721_v31  ;;  %1022 = vmatmul.msk.f32.gmra.mxu1 %vm581_vm10, %v721_v31  ;;  %v756_v41 = vpop.f32.mrf.mxu3  ;;  %v785_v42 = vpop.f32.mrf.mxu2 }
 0x2aa   : > { %v722_v40 = vld [vmem:[#allocation3 + $0x18] sm:$0xff] }
 0x2ab   : > { %1019 = vmatmul.msk.f32.vlgmr.msra.gmra.mxu3 %vm581_vm10, %v722_v40  ;;  %v759_v47 = vpop.f32.mrf.mxu3  ;;  %v788_v50 = vpop.f32.mrf.mxu2 }
 0x2b3   : > { %1023 = vmatmul.msk.f32.vlgmr.msrb.gmra.mxu3 %vm581_vm10, %v722_v40 }
 0x2b5   : > { %v791_v56 = vpop.f32.mrf.mxu2 }
 0x310   : > { %v830_v43 = vpop.f32.mrf.mxu0  ;;  %v859_v44 = vpop.f32.mrf.mxu1 }
 0x311   : > { %v871_v45 = vmul.f32 %v830_v43, %v756_v41  ;;  %v872_v46 = vmul.f32 %v859_v44, %v785_v42 }
 0x313   : > { %v887_v48 = vmul.f32 %v871_v45, %v1378_v32  ;;  %v888_v49 = vmul.f32 %v872_v46, %v1380_v33  ;;  %v762_v33 = vpop.f32.mrf.mxu3 }
 0x315   : > { %895 = vst [vmem:[%s1493_s19] sm:$0xff] %v887_v48 }
 0x316   : > { %896 = vst [vmem:[%s1493_s19 + $0x8] sm:$0xff] %v888_v49 }
 0x318   : > { %v833_v51 = vpop.f32.mrf.mxu0  ;;  %v862_v52 = vpop.f32.mrf.mxu1 }
 0x319   : > { %v873_v53 = vmul.f32 %v833_v51, %v759_v47  ;;  %v874_v54 = vmul.f32 %v862_v52, %v788_v50 }
 0x31b   : > { %v889_v55 = vmul.f32 %v873_v53, %v1384_v34  ;;  %v890_v32 = vmul.f32 %v874_v54, %v1386_v35  ;;  %v765_v63 = vpop.f32.mrf.mxu3 }
 0x31d   : > { %897 = vst [vmem:[%s1493_s19 + $0x10] sm:$0xff] %v889_v55 }
 0x31e   : > { %898 = vst [vmem:[%s1493_s19 + $0x18] sm:$0xff] %v890_v32 }
 0x320   : > { %v836_v57 = vpop.f32.mrf.mxu0  ;;  %v865_v58 = vpop.f32.mrf.mxu1 }
 0x321   : > { %v875_v59 = vmul.f32 %v836_v57, %v762_v33  ;;  %v876_v60 = vmul.f32 %v865_v58, %v791_v56 }
 0x323   : > { %v891_v61 = vmul.f32 %v875_v59, %v1390_v36  ;;  %v892_v62 = vmul.f32 %v876_v60, %v1392_v37  ;;  %v794_v36 = vpop.f32.mrf.mxu2 }
 0x325   : > { %899 = vst [vmem:[%s1493_s19 + $0x20] sm:$0xff] %v891_v61 }
 0x326   : > { %900 = vst [vmem:[%s1493_s19 + $0x28] sm:$0xff] %v892_v62 }
 0x32e   : > { %v839_v34 = vpop.f32.mrf.mxu3 }
 0x32f   : > { %v877_v35 = vmul.f32 %v839_v34, %v765_v63 }
 0x331   : > { %v893_v0 = vmul.f32 %v877_v35, %v1396_v38 }
 0x333   : > { %901 = vst [vmem:[%s1493_s19 + $0x30] sm:$0xff] %v893_v0 }
 0x336   : > { %v868_v37 = vpop.f32.mrf.mxu3 }
 0x337   : > { %v878_v1 = vmul.f32 %v868_v37, %v794_v36 }
 0x339   : > { %v894_v2 = vmul.f32 %v878_v1, %v1398_v39 }
 0x33b   : > { %902 = vst [vmem:[%s1493_s19 + $0x38] sm:$0xff] %v894_v2 }
 0x33c   : > { %1144 = shalt.err (!%p1141_p3)
}
 0x33d   : > { %s1183_s21 = smov 256   ;;  %s1184_s19 = smov 16  }
 0x33e   : > { %1037 = dma.vmem_to_hbm [thread:$0]  (%p1268_p5), %s918_s12, 1024, %s920_s13, %s904_s9, %s1183_s21, %s1183_s21, %s1184_s19  }
 0x33f PF: > { %p1043_p4 = scmp.ge.s32.totalorder %s1179_s30, 2  ;;  %s934_s26 = sand.u32 1, %s1167_s27  }
 0x340   : > { %s935_s10 = scalar_lea.sflag [#allocation5], %s934_s26 }
 0x341   : > { %p1040_p7 = pnand %p1043_p4, %p1272_p6 }
 0x343   : > { %p1041_p8 = pneg %p1040_p7 }
 0x345   : > { %1162 = dma.done.wait (%p1041_p8), %s935_s10, 1024  }
 0x346   : > { %1164 = vsyncadd (%p1041_p8), %s935_s10, 4294966272  ;;  %p18_p9 = scmp.ge.s32.totalorder %s1255_s11, 4   ;;  %s1554_s27 = smov %s1171_s28 }
 0x347   : > { %s1555_s28 = smov %s1175_s29  ;;  %s1556_s29 = smov %s1266_s14 }
 0x348   : > { %s1557_s30 = smov %s1255_s11  ;;  %20 = sbr.rel (!%p18_p9) target bundleno = 3 (0x3), region = 87 }
 0x34d   :  { %941 = vsyncpa [#allocation5], 1 }
 0x34e   :  { %943 = vsyncpa [#allocation5 + $0x1], 1 }

</bundles_post_ra>
